<compile_context>
chip_gen: v7x
topology: tpu7x:2x2x1
jax: 0.10.0
libtpu: 0.0.40
codegen_flags: <defaults>
</compile_context>

<pallas_src>
import math

import jax
import jax.numpy as jnp
from jax import lax
from jax.experimental import pallas as pl
from jax.experimental.pallas import tpu as pltpu


# ---------------------------------------------------------------------------
# helpers
# ---------------------------------------------------------------------------

def _tpu_defaults():
    """(default q tile, vmem_limit_bytes), generation aware."""
    cap = 128 * 1024 * 1024
    try:
        cap = int(pltpu.get_tpu_info().vmem_capacity_bytes)
    except Exception:
        pass
    if cap >= 96 * 1024 * 1024:           # v5e / v6e: 128 MiB physical VMEM
        return 512, 96 * 1024 * 1024
    return 256, 40 * 1024 * 1024          # v7x: 64 MiB physical VMEM


def _spec(block_shape, index_map, *, buffers=None):
    """BlockSpec; optionally single-buffered for grid-constant blocks."""
    if buffers is not None and hasattr(pl, "Buffered"):
        try:
            return pl.BlockSpec(block_shape, index_map,
                                pipeline_mode=pl.Buffered(buffers))
        except TypeError:
            pass
    return pl.BlockSpec(block_shape, index_map)


# ---------------------------------------------------------------------------
# kernel bodies
# ---------------------------------------------------------------------------

def _q_proj_kernel(x_ref, w_ref, b_ref, q_ref):
    """q[b, h, s_tile] = x[b, s_tile] @ Wq[h] + bq[h] (1/sqrt(d_head) folded)."""
    x = x_ref[0]                                          # (ts, d_embed) bf16
    q = jnp.dot(x, w_ref[0], preferred_element_type=jnp.float32) + b_ref[0]
    q_ref[0, 0] = q.astype(q_ref.dtype)


def _kv_proj_kernel(y_ref, wk_ref, bk_ref, wv_ref, bv_ref, k_ref, v_ref):
    """k/v[b, h, s_tile] = y[b, s_tile] @ W[h] + b[h].

    Computed exactly once per (batch, head) — never per query tile."""
    y = y_ref[0]                                          # (ts, d_cross) bf16
    k = jnp.dot(y, wk_ref[0], preferred_element_type=jnp.float32) + bk_ref[0]
    v = jnp.dot(y, wv_ref[0], preferred_element_type=jnp.float32) + bv_ref[0]
    k_ref[0, 0] = k.astype(k_ref.dtype)
    v_ref[0, 0] = v.astype(v_ref.dtype)


def _attention_kernel(q_ref, k_ref, v_ref, o_ref):
    """One (batch, head, q-tile) step: softmax(q k^T) v (scale already in q)."""
    q = q_ref[0, 0]                                       # (tq, d_head) bf16
    k = k_ref[0, 0]                                       # (Sk, d_head) bf16
    v = v_ref[0, 0]                                       # (Sk, d_head) bf16

    # Scores: contract the feature axis directly — no materialized k^T.
    s = lax.dot_general(q, k, (((1,), (1,)), ((), ())),
                        preferred_element_type=jnp.float32)       # (tq, Sk)
    s = s - jnp.max(s, axis=-1, keepdims=True)
    p = jnp.exp(s)
    denom = jnp.sum(p, axis=-1, keepdims=True)                    # (tq, 1)

    o = jnp.dot(p.astype(v.dtype), v,
                preferred_element_type=jnp.float32)               # (tq, d_head)
    # Normalize the (tq, d_head) output instead of the (tq, Sk) probabilities;
    # the reciprocal runs on the otherwise-idle EUP.
    o = o * pl.reciprocal(denom, approx=True)
    o_ref[0, 0] = o.astype(o_ref.dtype)


def _out_proj_kernel(o_ref, wo_ref, bo_ref, out_ref):
    """out[b, q_tile] = o[b, q_tile] @ Wo + bo — single K = d_embed matmul."""
    o = o_ref[0]                                          # (tq, d_embed) bf16
    out = jnp.dot(o, wo_ref[...], preferred_element_type=jnp.float32)
    out_ref[0] = (out + bo_ref[...]).astype(out_ref.dtype)


# ---------------------------------------------------------------------------
# wrapper
# ---------------------------------------------------------------------------

def cross_attention(x, y, params, *, n_head, tq=None,
                    matmul_dtype=jnp.bfloat16, vmem_limit_bytes=None):
    """x: [B, Sq, d_embed], y: [B, Sk, d_cross] -> [B, Sq, d_embed]."""
    B, Sq, d_embed = x.shape
    By, Sk, d_cross = y.shape
    assert By == B
    assert d_embed % n_head == 0, "d_embed must be divisible by n_head"
    d_head = d_embed // n_head

    wq, bq = params["wq"], params["bq"]   # (d_embed, d_cross), (1, d_cross)
    wk, bk = params["wk"], params["bk"]   # (d_cross, d_embed), (1, d_embed)
    wv, bv = params["wv"], params["bv"]   # (d_cross, d_embed), (1, d_embed)
    wo, bo = params["wo"], params["bo"]   # (d_embed, d_embed), (1, d_embed)

    # The module's head split (d_head = d_embed // n_head applied to q_proj's
    # output) is only consistent when d_cross == d_embed.
    assert wq.shape == (d_embed, d_embed), (
        "q_proj out_features must equal d_embed (d_cross == d_embed)")
    assert wk.shape == (d_cross, d_embed) and wv.shape == (d_cross, d_embed)
    assert wo.shape == (d_embed, d_embed)

    default_tq, default_vmem = _tpu_defaults()
    if tq is None:
        tq = default_tq
    if vmem_limit_bytes is None:
        vmem_limit_bytes = default_vmem

    f32 = jnp.float32
    cast = lambda a: a.astype(matmul_dtype)
    scale = 1.0 / math.sqrt(d_head)

    # Per-head weights/biases split OUTSIDE the kernels (plain XLA reshapes);
    # 1/sqrt(d_head) folded into the q projection (no extra VPU pass over q).
    wq_h = cast(wq.astype(f32) * scale).reshape(d_embed, n_head, d_head).transpose(1, 0, 2)
    wk_h = cast(wk).reshape(d_cross, n_head, d_head).transpose(1, 0, 2)
    wv_h = cast(wv).reshape(d_cross, n_head, d_head).transpose(1, 0, 2)
    bq_h = (bq.astype(f32) * scale).reshape(n_head, 1, d_head)
    bk_h = bk.astype(f32).reshape(n_head, 1, d_head)
    bv_h = bv.astype(f32).reshape(n_head, 1, d_head)
    wo_b = cast(wo)
    bo_f = bo.astype(f32)

    xb, yb = cast(x), cast(y)

    cparams2 = pltpu.CompilerParams(
        dimension_semantics=("parallel", "parallel"),
        vmem_limit_bytes=vmem_limit_bytes)
    cparams3 = pltpu.CompilerParams(
        dimension_semantics=("parallel", "parallel", "parallel"),
        vmem_limit_bytes=vmem_limit_bytes)

    # ---- 1a) per-head Q projection ----------------------------------------
    tsq = min(512, Sq)
    nsq = pl.cdiv(Sq, tsq)
    q_heads = pl.pallas_call(
        _q_proj_kernel,
        out_shape=jax.ShapeDtypeStruct((B, n_head, Sq, d_head), matmul_dtype),
        grid_spec=pltpu.PrefetchScalarGridSpec(
            num_scalar_prefetch=0,
            grid=(B, nsq, n_head),      # heads innermost: x tile fetched once
            in_specs=[
                pl.BlockSpec((1, tsq, d_embed), lambda b, s, h: (b, s, 0)),
                pl.BlockSpec((1, d_embed, d_head), lambda b, s, h: (h, 0, 0)),
                pl.BlockSpec((1, 1, d_head), lambda b, s, h: (h, 0, 0)),
            ],
            out_specs=pl.BlockSpec((1, 1, tsq, d_head),
                                   lambda b, s, h: (b, h, s, 0)),
        ),
        compiler_params=cparams3,
    )(xb, wq_h, bq_h)

    # ---- 1b) per-head K/V projection: ONCE per (batch, head) --------------
    tsk = min(512, Sk)
    nsk = pl.cdiv(Sk, tsk)
    k_heads, v_heads = pl.pallas_call(
        _kv_proj_kernel,
        out_shape=(
            jax.ShapeDtypeStruct((B, n_head, Sk, d_head), matmul_dtype),
            jax.ShapeDtypeStruct((B, n_head, Sk, d_head), matmul_dtype),
        ),
        grid_spec=pltpu.PrefetchScalarGridSpec(
            num_scalar_prefetch=0,
            grid=(B, nsk, n_head),
            in_specs=[
                pl.BlockSpec((1, tsk, d_cross), lambda b, s, h: (b, s, 0)),
                pl.BlockSpec((1, d_cross, d_head), lambda b, s, h: (h, 0, 0)),
                pl.BlockSpec((1, 1, d_head), lambda b, s, h: (h, 0, 0)),
                pl.BlockSpec((1, d_cross, d_head), lambda b, s, h: (h, 0, 0)),
                pl.BlockSpec((1, 1, d_head), lambda b, s, h: (h, 0, 0)),
            ],
            out_specs=(
                pl.BlockSpec((1, 1, tsk, d_head), lambda b, s, h: (b, h, s, 0)),
                pl.BlockSpec((1, 1, tsk, d_head), lambda b, s, h: (b, h, s, 0)),
            ),
        ),
        compiler_params=cparams3,
    )(yb, wk_h, bk_h, wv_h, bv_h)

    # ---- 2) attention: q-tiles innermost so K/V stay resident per head ----
    tq = min(tq, Sq)
    nq = pl.cdiv(Sq, tq)
    o_heads = pl.pallas_call(
        _attention_kernel,
        out_shape=jax.ShapeDtypeStruct((B, n_head, Sq, d_head), matmul_dtype),
        grid_spec=pltpu.PrefetchScalarGridSpec(
            num_scalar_prefetch=0,
            grid=(B, n_head, nq),
            in_specs=[
                pl.BlockSpec((1, 1, tq, d_head), lambda b, h, qt: (b, h, qt, 0)),
                pl.BlockSpec((1, 1, Sk, d_head), lambda b, h, qt: (b, h, 0, 0)),
                pl.BlockSpec((1, 1, Sk, d_head), lambda b, h, qt: (b, h, 0, 0)),
            ],
            out_specs=pl.BlockSpec((1, 1, tq, d_head),
                                   lambda b, h, qt: (b, h, qt, 0)),
        ),
        compiler_params=cparams3,
    )(q_heads, k_heads, v_heads)

    # ---- head concat: wrapper-side layout plumbing (lane-dense slab) ------
    o_flat = o_heads.transpose(0, 2, 1, 3).reshape(B, Sq, d_embed)

    # ---- 3) output projection: one wide matmul with K = d_embed -----------
    out = pl.pallas_call(
        _out_proj_kernel,
        out_shape=jax.ShapeDtypeStruct((B, Sq, d_embed), x.dtype),
        grid_spec=pltpu.PrefetchScalarGridSpec(
            num_scalar_prefetch=0,
            grid=(B, nq),
            in_specs=[
                pl.BlockSpec((1, tq, d_embed), lambda b, qt: (b, qt, 0)),
                _spec((d_embed, d_embed), lambda b, qt: (0, 0), buffers=1),
                _spec((1, d_embed), lambda b, qt: (0, 0), buffers=1),
            ],
            out_specs=pl.BlockSpec((1, tq, d_embed), lambda b, qt: (b, qt, 0)),
        ),
        compiler_params=cparams2,
    )(o_flat, wo_b, bo_f)

    return out


# ---------------------------------------------------------------------------
# params + pure-JAX reference
# ---------------------------------------------------------------------------

def init_params(key, d_embed, d_cross):
    """nn.Linear-style init; weights pre-transposed to (in, out), bias (1, out)."""
    ks = jax.random.split(key, 8)

    def lin(kw, kb, d_in, d_out):
        bound = 1.0 / math.sqrt(d_in)
        w = jax.random.uniform(kw, (d_in, d_out), jnp.float32, -bound, bound)
        b = jax.random.uniform(kb, (1, d_out), jnp.float32, -bound, bound)
        return w, b

    wq, bq = lin(ks[0], ks[1], d_embed, d_cross)   # q_proj: d_embed -> d_cross
    wk, bk = lin(ks[2], ks[3], d_cross, d_embed)   # k_proj: d_cross -> d_embed
    wv, bv = lin(ks[4], ks[5], d_cross, d_embed)   # v_proj: d_cross -> d_embed
    wo, bo = lin(ks[6], ks[7], d_embed, d_embed)   # out_proj
    return dict(wq=wq, bq=bq, wk=wk, bk=bk, wv=wv, bv=bv, wo=wo, bo=bo)


def cross_attention_ref(x, y, params, *, n_head, matmul_dtype=jnp.bfloat16):
    """Pure-JAX reference with the same bf16-operand / f32-accumulate scheme."""
    B, Sq, d_embed = x.shape
    _, Sk, _ = y.shape
    d_head = d_embed // n_head
    f32 = jnp.float32
    cast = lambda a: a.astype(matmul_dtype)

    q = jnp.einsum("bsd,df->bsf", cast(x), cast(params["wq"]),
                   preferred_element_type=f32) + params["bq"]
    k = jnp.einsum("bsd,df->bsf", cast(y), cast(params["wk"]),
                   preferred_element_type=f32) + params["bk"]
    v = jnp.einsum("bsd,df->bsf", cast(y), cast(params["wv"]),
                   preferred_element_type=f32) + params["bv"]

    q = q.reshape(B, Sq, n_head, d_head).transpose(0, 2, 1, 3)
    q = q * (1.0 / math.sqrt(d_head))
    k = k.reshape(B, Sk, n_head, d_head).transpose(0, 2, 1, 3)
    v = v.reshape(B, Sk, n_head, d_head).transpose(0, 2, 1, 3)

    s = jnp.einsum("bhqd,bhkd->bhqk", cast(q), cast(k),
                   preferred_element_type=f32)
    p = jax.nn.softmax(s, axis=-1)
    o = jnp.einsum("bhqk,bhkd->bhqd", cast(p), cast(v),
                   preferred_element_type=f32)
    o = o.transpose(0, 2, 1, 3).reshape(B, Sq, d_embed)
    out = jnp.einsum("bsd,df->bsf", cast(o), cast(params["wo"]),
                     preferred_element_type=f32) + params["bo"]
    return out.astype(x.dtype)


if __name__ == "__main__":
    # Small shapes; d_cross == d_embed is required by the module's own head
    # split (d_head = d_embed // n_head applied to the q_proj output).
    B, Sq, Sk = 2, 8, 16
    d_embed = d_cross = 32
    n_head = 4

    key = jax.random.PRNGKey(0)
    kx, ky, kp = jax.random.split(key, 3)
    x = jax.random.normal(kx, (B, Sq, d_embed), jnp.float32)
    y = jax.random.normal(ky, (B, Sk, d_cross), jnp.float32)
    params = init_params(kp, d_embed, d_cross)

    out = jax.block_until_ready(cross_attention(x, y, params, n_head=n_head))
    ref = cross_attention_ref(x, y, params, n_head=n_head)
    assert out.shape == (B, Sq, d_embed)
    assert jnp.allclose(out, ref, atol=2e-2, rtol=2e-2), "mismatch vs reference"

    # Non-divisible Sq exercises the padded last q-tile (masked output store).
    Sq2 = 12
    x2 = jax.random.normal(jax.random.PRNGKey(1), (1, Sq2, d_embed), jnp.float32)
    y2 = jax.random.normal(jax.random.PRNGKey(2), (1, Sk, d_cross), jnp.float32)
    out2 = jax.block_until_ready(
        cross_attention(x2, y2, params, n_head=n_head, tq=8))
    ref2 = cross_attention_ref(x2, y2, params, n_head=n_head)
    assert out2.shape == (1, Sq2, d_embed)
    assert jnp.allclose(out2, ref2, atol=2e-2, rtol=2e-2), "mismatch (padded tile)"

    print("KERNEL_OK")
</pallas_src>

<mosaic_0001>
module attributes {stable_mosaic.version = 11 : i64} {
  func.func @_q_proj_kernel(%arg0: i32, %arg1: i32, %arg2: i32, %arg3: memref<1x8x32xbf16, #tpu.memory_space<vmem>>, %arg4: memref<1x32x8xbf16, #tpu.memory_space<vmem>>, %arg5: memref<1x1x8xf32, #tpu.memory_space<vmem>>, %arg6: memref<1x1x8x8xbf16, #tpu.memory_space<vmem>>) attributes {dimension_semantics = [#tpu.dimension_semantics<parallel>, #tpu.dimension_semantics<parallel>, #tpu.dimension_semantics<parallel>], iteration_bounds = array<i64: 2, 1, 4>, scalar_prefetch = 0 : i64, scratch_operands = 0 : i64, tpu.core_type = #tpu.core_type<tc>, window_params = [{transform_indices = @transform_0, window_bounds = array<i64: 1, 8, 32>}, {transform_indices = @transform_1, window_bounds = array<i64: 1, 32, 8>}, {transform_indices = @transform_2, window_bounds = array<i64: 1, 1, 8>}, {transform_indices = @transform_3, window_bounds = array<i64: 1, 1, 8, 8>}]} {
    %c0 = arith.constant 0 : index
    %c0_0 = arith.constant 0 : index
    %c0_1 = arith.constant 0 : index
    %0 = vector.load %arg3[%c0, %c0_0, %c0_1] : memref<1x8x32xbf16, #tpu.memory_space<vmem>>, vector<1x8x32xbf16>
    %1 = vector.shape_cast %0 : vector<1x8x32xbf16> to vector<8x32xbf16>
    %c0_2 = arith.constant 0 : index
    %c0_3 = arith.constant 0 : index
    %c0_4 = arith.constant 0 : index
    %2 = vector.load %arg4[%c0_2, %c0_3, %c0_4] : memref<1x32x8xbf16, #tpu.memory_space<vmem>>, vector<1x32x8xbf16>
    %3 = vector.shape_cast %2 : vector<1x32x8xbf16> to vector<32x8xbf16>
    %cst = arith.constant dense<0.000000e+00> : vector<8x8xf32>
    %4 = tpu.matmul %1, %3, %cst {dimension_numbers = #tpu.dot_dimension_numbers<[1], [0], [0], [1], [0, 0, 1, 1], [], []>} : vector<8x32xbf16>, vector<32x8xbf16>, vector<8x8xf32> -> vector<8x8xf32>
    %c0_5 = arith.constant 0 : index
    %c0_6 = arith.constant 0 : index
    %c0_7 = arith.constant 0 : index
    %5 = vector.load %arg5[%c0_5, %c0_6, %c0_7] : memref<1x1x8xf32, #tpu.memory_space<vmem>>, vector<1x1x8xf32>
    %6 = vector.shape_cast %5 : vector<1x1x8xf32> to vector<1x8xf32>
    %7 = vector.broadcast %6 : vector<1x8xf32> to vector<8x8xf32>
    %8 = arith.addf %4, %7 : vector<8x8xf32>
    %9 = arith.truncf %8 : vector<8x8xf32> to vector<8x8xbf16>
    %c0_8 = arith.constant 0 : index
    %c0_9 = arith.constant 0 : index
    %c0_10 = arith.constant 0 : index
    %c0_11 = arith.constant 0 : index
    %10 = vector.load %arg6[%c0_8, %c0_9, %c0_10, %c0_11] : memref<1x1x8x8xbf16, #tpu.memory_space<vmem>>, vector<1x1x8x8xbf16>
    %11 = vector.shape_cast %10 : vector<1x1x8x8xbf16> to vector<8x8xbf16>
    %12 = vector.shape_cast %9 : vector<8x8xbf16> to vector<1x1x8x8xbf16>
    tpu.vector_store %arg6[%c0_8, %c0_9, %c0_10, %c0_11], %12 {strides = array<i32>} : memref<1x1x8x8xbf16, #tpu.memory_space<vmem>>, vector<1x1x8x8xbf16>,
    return
  }
  func.func @transform_0(%arg0: i32, %arg1: i32, %arg2: i32) -> (i32, i32, i32) {
    %c0_i32 = arith.constant 0 : i32
    %c0_i32_0 = arith.constant 0 : i32
    return %arg0, %arg1, %c0_i32 : i32, i32, i32
  }
  func.func @transform_1(%arg0: i32, %arg1: i32, %arg2: i32) -> (i32, i32, i32) {
    %c0_i32 = arith.constant 0 : i32
    %c0_i32_0 = arith.constant 0 : i32
    %c0_i32_1 = arith.constant 0 : i32
    return %arg2, %c0_i32, %c0_i32_0 : i32, i32, i32
  }
  func.func @transform_2(%arg0: i32, %arg1: i32, %arg2: i32) -> (i32, i32, i32) {
    %c0_i32 = arith.constant 0 : i32
    %c0_i32_0 = arith.constant 0 : i32
    %c0_i32_1 = arith.constant 0 : i32
    return %arg2, %c0_i32, %c0_i32_0 : i32, i32, i32
  }
  func.func @transform_3(%arg0: i32, %arg1: i32, %arg2: i32) -> (i32, i32, i32, i32) {
    %c0_i32 = arith.constant 0 : i32
    %c0_i32_0 = arith.constant 0 : i32
    return %arg0, %arg2, %arg1, %c0_i32 : i32, i32, i32, i32
  }
}

</mosaic_0001>

<bundles_post_ra>
// kernel: tpu_custom_call.1
= control target key start
LH: loop header
LB: loop body
LE: loop exit
PB: predicated region body
PF: predicated region fallthrough
CT: control target
= control target key end

     0   :  { %s1300_s0 = inlined_call_operand.hbm [shape: bf16[2,8,32], index: 0, kind: input, shape index: {}]   ;;  %s1301_s1 = inlined_call_operand.hbm [shape: bf16[4,32,8], index: 1, kind: input, shape index: {}]   ;;  %s1302_s2 = inlined_call_operand.hbm [shape: f32[4,1,8], index: 2, kind: input, shape index: {}]   ;;  %s1303_s3 = inlined_call_operand.hbm [shape: bf16[2,4,8,8], index: 3, kind: output, shape index: {}]  }
   0x1   :  { %1317 = sst [smem:[#allocation21_spill]] %s1300_s0 }
   0x2   :  { %1318 = sst [smem:[#allocation22_spill]] %s1301_s1 }
   0x3   :  { %1319 = sst [smem:[#allocation23_spill]] %s1303_s3 }
   0x4   :  { %8 = vsyncpa [#allocation3], 0 }
   0x5   :  { %10 = vsyncpa [#allocation3 + $0x1], 0 }
   0x6   :  { %11 = vsyncpa [#allocation6], 0 }
   0x7   :  { %13 = vsyncpa [#allocation6 + $0x1], 0 }
   0x8   :  { %14 = vsyncpa [#allocation4], 0 }
   0x9   :  { %16 = vsyncpa [#allocation4 + $0x1], 0  ;;  %s947_s12 = smov 0   ;;  %s949_s13 = smov 0  }
   0xa   :  { %s951_s14 = smov 0   ;;  %s953_s15 = smov 0  }
   0xb   :  { %s955_s16 = smov 0   ;;  %s957_s17 = smov 0  }
   0xc   :  { %s959_s18 = smov 0   ;;  %s961_s19 = smov 0  }
   0xd   :  { %s963_s20 = smov 0   ;;  %s965_s21 = smov 0  }
   0xe   :  { %s967_s22 = smov 0   ;;  %s969_s23 = smov 0  }
   0xf   :  { %s971_s24 = smov 0   ;;  %s973_s25 = smov 0  }
  0x10 LB: > { %1320 = sst [smem:[#allocation12_spill]] %s897_s20  ;;  %p58_p0 = scmp.eq.s32.totalorder %s917_s25, 0  ;;  %s917_s25 = sphi %s973_s25, %s22_s25   ;;  %s913_s24 = sphi %s971_s24, %s1360_s24   ;;  %s909_s23 = sphi %s969_s23, %s1371_s23   ;;  %s905_s22 = sphi %s967_s22, %s1370_s22   ;;  %s901_s21 = sphi %s965_s21, %s1369_s21   ;;  %s897_s20 = sphi %s963_s20, %s1357_s20   ;;  %s893_s19 = sphi %s961_s19, %s1368_s19   ;;  %s889_s18 = sphi %s959_s18, %s1367_s18   ;;  %s885_s17 = sphi %s957_s17, %s1366_s17   ;;  %s881_s16 = sphi %s955_s16, %s1365_s16   ;;  %s877_s15 = sphi %s953_s15, %s1364_s15   ;;  %s873_s14 = sphi %s951_s14, %s1363_s14   ;;  %s869_s13 = sphi %s949_s13, %s1362_s13   ;;  %s865_s12 = sphi %s947_s12, %s1361_s12  }
  0x11   : > { %1321 = sst [smem:[#allocation13_spill]] %s901_s21  ;;  %p83_p1 = scmp.ne.s32.totalorder %s885_s17, %s881_s16 }
  0x12   : > { %1322 = sst [smem:[#allocation14_spill]] %s905_s22  ;;  %p1304_p3 = scmp.lt.s32.totalorder %s917_s25, 8 }
  0x13   : > { %1323 = sst [smem:[#allocation15_spill]] %s913_s24  ;;  %p85_p4 = por %p83_p1, %p58_p0 }
  0x14   : > { %s188_s27 = sand.u32 1, %s917_s25   ;;  %s1305_s28 = sand.u32 1, %s885_s17  }
  0x15   : > { %s506_s29 = sshll.u32 %s1305_s28, 4  ;;  %s523_s30 = sshll.u32 %s909_s23, 8 }
  0x16   : > { %s1324_s1 = sld [smem:[#allocation22_spill]]  ;;  %s192_s7 = scalar_lea.vmem [#allocation5], %s506_s29 }
  0x17   : > { %s199_s8 = sshll.u32 %s192_s7, 4  ;;  %p1038_p5 = pnand %p1304_p3, %p85_p4  ;;  %s1042_s8 = int_to_ptr.vmem [resolvable:$true] %s199_s8 }
  0x18   : > { %s1044_s10 = scalar_lea.sflag [#allocation6], %s188_s27 }
  0x19   : > { %p1308_p7 = pneg %p1038_p5 }
  0x1c   : > { %s1034_s6 = scalar_lea.hbm %s1324_s1, %s523_s30  ;;  %s682_s4 = scalar_lea.hbm %s1324_s1, 1024 }
  0x1d   : > { %s677_s11 = scalar_lea.hbm %s1034_s6, 256  ;;  %p683_p10 = scmp.lt.u32.totalorder %s1034_s6, %s1324_s1 }
  0x1e   : > { %p678_p6 = scmp.ne.s32.totalorder %s1034_s6, %s677_s11  ;;  %p684_p11 = scmp.lt.u32.totalorder %s682_s4, %s677_s11 }
  0x1f   : > { %p686_p13 = scmp.lt.u32.totalorder %s677_s11, %s1034_s6 }
  0x20   : > { %p680_p8 = pnand %p1308_p7, %p678_p6  ;;  %p685_p12 = por %p684_p11, %p683_p10 }
  0x22   : > { %p681_p9 = pneg %p680_p8  ;;  %p687_p1 = por %p686_p13, %p685_p12 }
  0x24   : > { %p688_p4 = pnand %p687_p1, %p681_p9 }
  0x26   : > { %691 = shalt.err (!%p688_p4)
}
  0x27   : > { %s692_s27 = scalar_lea.vmem %s1042_s8, 256  ;;  %s919_s29 = smov [#allocation5]  }
  0x28   : > { %p693_p6 = scmp.ne.s32.totalorder %s1042_s8, %s692_s27  ;;  %s697_s30 = sshll.u32 %s919_s29, 4  ;;  %s698_s30 = int_to_ptr.vmem [resolvable:$false] %s697_s30 }
  0x29   : > { %s699_s5 = scalar_lea.vmem %s698_s30, 512  ;;  %p700_p2 = scmp.lt.s32.totalorder %s1042_s8, %s698_s30 }
  0x2a   : > { %p695_p8 = pnand %p693_p6, %p1308_p7  ;;  %p701_p10 = scmp.lt.s32.totalorder %s699_s5, %s692_s27 }
  0x2c   : > { %p696_p3 = pneg %p695_p8  ;;  %p702_p11 = por %p701_p10, %p700_p2 }
  0x2e   : > { %p703_p12 = pnand %p702_p11, %p696_p3 }
  0x30   : > { %706 = shalt.err (!%p703_p12)
}
  0x31   : > { %s920_s11 = smov 64   ;;  %s921_s4 = smov 4  }
  0x32   : > { %549 = dma.hbm_to_vmem [thread:$0]  (!%p1038_p5), %s1034_s6, 256, %s1042_s8, %s1044_s10, %s920_s11, %s920_s11, %s921_s4  }
  0x33   : > { %p510_p2 = scmp.ge.s32.totalorder %s917_s25, 1  ;;  %p224_p3 = scmp.lt.s32.totalorder %s917_s25, 9 }
  0x34   : > { %s1079_s27 = sadd.s32 4294967295, %s917_s25   ;;  %s501_s29 = sadd.s32 4294967294, %s917_s25  }
  0x35   : > { %p1074_p9 = pnand %p510_p2, %p224_p3  ;;  %s34_s30 = sadd.s32 1, %s909_s23 }
  0x36   : > { %p35_p13 = scmp.ge.s32.totalorder %s34_s30, 4  ;;  %s41_s5 = sadd.s32 1, %s913_s24 }
  0x37   : > { %s1326_s7 = scalar_select %p1074_p9, 1, 0 }
  0x38   : > { %s50_s28 = sadd.s32 1, %s897_s20  ;;  %p57_p1 = scmp.ne.s32.totalorder %s897_s20, %s893_s19 }
  0x39   : > { %s1373_s30 = smov (%p35_p13, %s34_s30), 0  ;;  %s1375_s5 = smov (!%p35_p13, %s41_s5), %s913_s24 }
  0x3a   : > { %1327 = sst [smem:[#allocation16_spill]] %s1373_s30  ;;  %p1092_p4 = por %p58_p0, %p57_p1 }
  0x3b   : > { %p63_p6 = scmp.ne.s32.totalorder %s893_s19, %s889_s18  ;;  %p43_p8 = scmp.ge.s32.totalorder %s1375_s5, 2 }
  0x3c   : > { %p64_p10 = scmp.eq.s32.totalorder %s1079_s27, 0  ;;  %s73_s8 = ssub.s32 %s909_s23, %s1373_s30 }
  0x3d   : > { %s132_s11 = sadd.s32 1, %s873_s14  ;;  %s1377_s5 = smov (%p43_p8, %s1375_s5), 0 }
  0x3e   : > { %1329 = sst [smem:[#allocation17_spill]] %s1377_s5  ;;  %p1104_p11 = por %p64_p10, %p63_p6 }
  0x3f   : > { %p74_p0 = scmp.eq.s32.totalorder %s73_s8, 0  ;;  %s45_s26 = ssub.s32 %s913_s24, %s1377_s5 }
  0x40   : > { %s1330_s4 = scalar_select %p1104_p11, 1, 0 }
  0x41   : > { %p1331_p12 = scmp.ne.s32.totalorder %s881_s16, %s877_s15  ;;  %p48_p3 = scmp.eq.s32.totalorder %s45_s26, 0 }
  0x42   : > { %s127_s1 = sor.u32 %s73_s8, %s45_s26  ;;  %s1334_s30 = sadd.s32 1, %s885_s17 }
  0x43   : > { %p1113_p2 = por %p1331_p12, %p64_p10  ;;  %p130_p13 = scmp.eq.s32.totalorder %s127_s1, 0 }
  0x44   : > { %s1120_s3 = scalar_select %p74_p0, %s885_s17, %s1334_s30  }
  0x45   : > { %s1332_s18 = scalar_select %p1113_p2, 1, 0 }
  0x46   : > { %1335 = sst [smem:[#allocation19_spill]] %s1120_s3  ;;  %p142_p1 = scmp.ne.s32.totalorder %s873_s14, %s869_s13 }
  0x47   : > { %1333 = sst [smem:[#allocation18_spill]] %s1332_s18  ;;  %p143_p6 = scmp.eq.s32.totalorder %s1079_s27, 7 }
  0x48   : > { %s1123_s21 = scalar_select %p48_p3, %s897_s20, %s50_s28  }
  0x49   : > { %p148_p8 = scmp.ne.s32.totalorder %s869_s13, %s865_s12  ;;  %p1133_p7 = por %p143_p6, %p142_p1 }
  0x4a   : > { %1336 = sst [smem:[#allocation20_spill]] %s1123_s21  ;;  %p149_p10 = scmp.eq.s32.totalorder %s501_s29, 7 }
  0x4b   : > { %s1131_s22 = scalar_select %p130_p13, %s873_s14, %s132_s11  }
  0x4c   : > { %s1337_s15 = scalar_select %p1133_p7, 1, 0 }
  0x4d   : > { %s169_s5 = sand.u32 1, %s897_s20   ;;  %s505_s18 = sshll.u32 %s913_s24, 6 }
  0x4e   : > { %p1139_p12 = por %p149_p10, %p148_p8  ;;  %s504_s30 = sshll.u32 %s169_s5, 2 }
  0x4f   : > { %s1339_s0 = sld [smem:[#allocation21_spill]]  ;;  %p1340_p0 = scmp.lt.s32.totalorder %s917_s25, 8 }
  0x50   : > { %s1338_s26 = scalar_select %p1139_p12, 1, 0 }
  0x51   : > { %p1152_p3 = pnand %p1340_p0, %p1092_p4  ;;  %s173_s11 = scalar_lea.vmem [#allocation2], %s504_s30 }
  0x52   : > { %s181_s24 = sshll.u32 %s173_s11, 4  ;;  %s170_s21 = scalar_lea.sflag [#allocation3], %s169_s5  ;;  %s1156_s24 = int_to_ptr.vmem [resolvable:$true] %s181_s24 }
  0x53   : > { %p709_p1 = pneg %p1152_p3 }
  0x55   : > { %s1146_s1 = scalar_lea.hbm %s1339_s0, %s505_s18  ;;  %s712_s8 = scalar_lea.hbm %s1339_s0, 128 }
  0x56   : > { %s707_s28 = scalar_lea.hbm %s1146_s1, 64  ;;  %p713_p4 = scmp.lt.u32.totalorder %s1146_s1, %s1339_s0 }
  0x57   : > { %p708_p13 = scmp.ne.s32.totalorder %s1146_s1, %s707_s28  ;;  %p714_p10 = scmp.lt.u32.totalorder %s712_s8, %s707_s28 }
  0x58   : > { %p716_p12 = scmp.lt.u32.totalorder %s707_s28, %s1146_s1 }
  0x59   : > { %p710_p6 = pnand %p709_p1, %p708_p13  ;;  %p715_p0 = por %p714_p10, %p713_p4 }
  0x5b   : > { %p711_p8 = pneg %p710_p6  ;;  %p717_p7 = por %p716_p12, %p715_p0 }
  0x5d   : > { %p718_p2 = pnand %p717_p7, %p711_p8 }
  0x5f   : > { %721 = shalt.err (!%p718_p2)
}
  0x60   : > { %s722_s5 = scalar_lea.vmem %s1156_s24, 64  ;;  %s922_s30 = smov [#allocation2]  }
  0x61   : > { %p723_p13 = scmp.ne.s32.totalorder %s1156_s24, %s722_s5  ;;  %s727_s11 = sshll.u32 %s922_s30, 4  ;;  %s728_s11 = int_to_ptr.vmem [resolvable:$false] %s727_s11 }
  0x62   : > { %s729_s3 = scalar_lea.vmem %s728_s11, 128  ;;  %p730_p9 = scmp.lt.s32.totalorder %s1156_s24, %s728_s11 }
  0x63   : > { %p725_p6 = pnand %p723_p13, %p709_p1  ;;  %p731_p4 = scmp.lt.s32.totalorder %s729_s3, %s722_s5 }
  0x65   : > { %p726_p11 = pneg %p725_p6  ;;  %p732_p10 = por %p731_p4, %p730_p9 }
  0x67   : > { %p733_p12 = pnand %p732_p10, %p726_p11 }
  0x69   : > { %736 = shalt.err (!%p733_p12)
}
  0x6a   : > { %546 = dma.hbm_to_vmem [thread:$0]  (!%p1152_p3), %s1146_s1, 64, %s1156_s24, %s170_s21  }
  0x6b   : > { %s509_s20 = sshll.u32 %s909_s23, 4  ;;  %s1342_s28 = sand.u32 1, %s885_s17  }
  0x6c   : > { %s212_s6 = scalar_lea.vmem [#allocation7], %s1342_s28  ;;  %s217_s11 = scalar_lea.hbm %s1302_s2, %s509_s20 }
  0x6d   : > { %s219_s18 = sshll.u32 %s212_s6, 4  ;;  %s737_s5 = scalar_lea.hbm %s217_s11, 16  ;;  %s220_s18 = int_to_ptr.vmem [resolvable:$true] %s219_s18 }
  0x6e   : > { %p738_p7 = scmp.ne.s32.totalorder %s217_s11, %s737_s5  ;;  %p1343_p9 = pneg %p1038_p5 }
  0x6f   : > { %s742_s0 = scalar_lea.hbm %s1302_s2, 64  ;;  %p743_p3 = scmp.lt.u32.totalorder %s217_s11, %s1302_s2 }
  0x70   : > { %p740_p11 = pnand %p738_p7, %p1343_p9  ;;  %p744_p1 = scmp.lt.u32.totalorder %s742_s0, %s737_s5 }
  0x71   : > { %p746_p0 = scmp.lt.u32.totalorder %s737_s5, %s217_s11 }
  0x72   : > { %p741_p2 = pneg %p740_p11  ;;  %p745_p8 = por %p744_p1, %p743_p3 }
  0x74   : > { %p747_p13 = por %p746_p0, %p745_p8 }
  0x76   : > { %p748_p6 = pnand %p747_p13, %p741_p2 }
  0x78   : > { %751 = shalt.err (!%p748_p6)
}
  0x79   : > { %s752_s1 = scalar_lea.vmem %s220_s18, 16  ;;  %p1344_p10 = pmov %p1343_p9 }
  0x7a   : > { %p753_p4 = scmp.ne.s32.totalorder %s220_s18, %s752_s1  ;;  %s923_s20 = smov [#allocation7]  }
  0x7b   : > { %s757_s28 = sshll.u32 %s923_s20, 4  ;;  %s758_s28 = int_to_ptr.vmem [resolvable:$false] %s757_s28 }
  0x7c   : > { %p755_p12 = pnand %p753_p4, %p1344_p10  ;;  %s759_s6 = scalar_lea.vmem %s758_s28, 32 }
  0x7d   : > { %p760_p9 = scmp.lt.s32.totalorder %s220_s18, %s758_s28  ;;  %p761_p11 = scmp.lt.s32.totalorder %s759_s6, %s752_s1 }
  0x7e   : > { %p756_p7 = pneg %p755_p12 }
  0x7f   : > { %p762_p1 = por %p761_p11, %p760_p9 }
  0x81   : > { %p763_p3 = pnand %p762_p1, %p756_p7 }
  0x83   : > { %766 = shalt.err (!%p763_p3)
}
  0x84   : > { %552 = dma.hbm_to_vmem [thread:$0]  (!%p1038_p5), %s217_s11, 16, %s220_s18, %s1044_s10  }
  0x85   : > { %p1345_p2 = scmp.ne.s32.totalorder %s1326_s7, 0 }
  0x86   : > { %s230_s0 = sand.u32 (!%p1345_p2), 1, %s893_s19   ;;  %p1346_p8 = scmp.ne.s32.totalorder (!%p1345_p2), %s1330_s4, 0 }
  0x87   : > { %228 = sbr.rel (%p1345_p2) target bundleno = 391 (0x187), region = 32  ;;  %s511_s8 = sshll.u32 (!%p1345_p2), %s230_s0, 2 }
  0x88   : > { %s231_s30 = scalar_lea.sflag (!%p1345_p2), [#allocation3], %s230_s0  ;;  %s234_s5 = scalar_lea.vmem (!%p1345_p2), [#allocation2], %s511_s8 }
  0x8e   : > { %852 = dma.done.wait (%p1346_p8), %s231_s30, 64  }
  0x8f   : > { %854 = vsyncadd (%p1346_p8), %s231_s30, 4294967232  ;;  %s1347_s29 = sld [smem:[#allocation18_spill]]  ;;  %s239_s9 = sand.u32 1, %s1079_s27  }
  0x90   : > { %s241_s3 = sand.u32 1, %s881_s16   ;;  %s240_s18 = scalar_lea.sflag [#allocation6], %s239_s9 }
  0x91   : > { %s512_s10 = sshll.u32 %s241_s3, 4 }
  0x92   : > { %s243_s7 = scalar_lea.vmem [#allocation5], %s512_s10 }
  0x95   : > { %p1348_p5 = scmp.ne.s32.totalorder %s1347_s29, 0 }
  0x97   : > { %856 = dma.done.wait (%p1348_p5), %s240_s18, 272  }
  0x98   : > { %858 = vsyncadd (%p1348_p5), %s240_s18, 4294967024  ;;  %s1349_s11 = sld [smem:[#allocation14_spill]]  ;;  %s1350_s21 = sld [smem:[#allocation13_spill]]  ;;  %v924_v0 = vmov 0.0   ;;  %vm925_vm0 = vmmov 0   ;;  %v675_v1 = vld [vmem:[%s243_s7] sm:$0xff]  }
  0x99   : > { %527 = vmatprep.subr.bf16.mxu0 %v924_v0  ;;  %531 = vmatprep.mubr.msk.bf16.mxu0 %vm925_vm0, %v924_v0  ;;  %v676_v2 = vld [vmem:[%s243_s7 + $0x8] sm:$0xff]   ;;  %vm308_vm1 = vcmask 261120   ;;  %s280_s27 = sand.u32 1, %s869_s13   ;;  %s251_s20 = scalar_lea.vmem [#allocation7], %s241_s3  ;;  %vm353_vm2 = vcmask 60416  }
  0x9a   : > { %528 = vmatpush3.bf16.msra.mxu0 %v675_v1  ;;  %v284_v3 = vld [vmem:[%s234_s5] sm:$0xf]  ;;  %s513_s4 = sshll.u32 %s280_s27, 2  ;;  %s1351_s5 = sld [smem:[#allocation23_spill]] }
  0x9b   : > { %529 = vmatprep.subr.bf16.mxu0 %v924_v0  ;;  %v514_v4 = vld [vmem:[%s251_s20] ss:$0 sm:$0xff]  ;;  %s282_s6 = scalar_lea.vmem [#allocation8], %s513_s4  ;;  %s356_s9 = scalar_lea.sflag [#allocation4], %s280_s27 }
  0x9c   : > { %s372_s0 = sshll.u32 %s282_s6, 4  ;;  %p1352_p13 = scmp.ne.s32.totalorder %s1337_s15, 0  ;;  %s1225_s0 = int_to_ptr.vmem [resolvable:$true] %s372_s0 }
  0x9d   : > { %s767_s3 = scalar_lea.vmem %s1225_s0, 64  ;;  %s926_s10 = smov [#allocation8]  }
  0x9e   : > { %530 = vmatpush3.bf16.msra.mxu0 %v676_v2  ;;  %s519_s24 = sshll.u32 %s1349_s11, 2  ;;  %p768_p0 = scmp.ne.s32.totalorder %s1225_s0, %s767_s3 }
  0x9f   : > { %s368_s1 = sadd.s32 %s1350_s21, %s519_s24  ;;  %s771_s18 = sshll.u32 %s926_s10, 4  ;;  %s772_s18 = int_to_ptr.vmem [resolvable:$false] %s771_s18 }
  0xa0   : > { %s520_s28 = sshll.u32 %s368_s1, 6  ;;  %p769_p6 = pnand %p768_p0, %p1352_p13 }
  0xa1   : > { %532 = vmatmul.mubr.msk.bf16.vlgmr.msra.gmra.mrb[0].mxu0 %vm308_vm1, %v284_v3  ;;  %s1223_s29 = scalar_lea.hbm %s1351_s5, %s520_s28  ;;  %s773_s7 = scalar_lea.vmem %s772_s18, 128 }
  0xa2   : > { %p770_p4 = pneg %p769_p6  ;;  %p774_p10 = scmp.lt.s32.totalorder %s1225_s0, %s772_s18 }
  0xa3   : > { %p775_p12 = scmp.lt.s32.totalorder %s773_s7, %s767_s3 }
  0xa5   : > { %p776_p7 = por %p775_p12, %p774_p10 }
  0xa7   : > { %p777_p9 = pnand %p776_p7, %p770_p4 }
 0x174   : > { %v346_v5 = vpop.f32.mrb[0].mxu0 }
 0x175   : > { %v347_v6 = vadd.f32 %v514_v4, %v346_v5  ;;  %v533_v7 = vpop.f32.mrb[1].mxu0 }
 0x176   : > { %v349_v8 = vpop.f32.mrb[2].mxu0 }
 0x177   : > { %v352_v9 = vpack.c.bf16 %v347_v6, %v347_v6  ;;  %v534_v10 = vpop.f32.mrb[3].mxu0 }
 0x179   : > { %354 = vst.msk [vmem:[%s282_s6] sm:$0xf] %vm353_vm2, %v352_v9 }
 0x17a   : > { %780 = shalt.err (!%p777_p9)
}
 0x17b   : > { %s781_s11 = scalar_lea.hbm %s1223_s29, 64  ;;  %s785_s4 = scalar_lea.hbm %s1351_s5, 512 }
 0x17c   : > { %p782_p11 = scmp.ne.s32.totalorder %s1223_s29, %s781_s11  ;;  %p786_p2 = scmp.lt.u32.totalorder %s1223_s29, %s1351_s5 }
 0x17d   : > { %p787_p8 = scmp.lt.u32.totalorder %s785_s4, %s781_s11  ;;  %p789_p0 = scmp.lt.u32.totalorder %s781_s11, %s1223_s29 }
 0x17e   : > { %p783_p1 = pnand %p782_p11, %p1352_p13 }
 0x17f   : > { %p788_p5 = por %p787_p8, %p786_p2 }
 0x180   : > { %p784_p3 = pneg %p783_p1 }
 0x181   : > { %p790_p6 = por %p789_p0, %p788_p5 }
 0x183   : > { %p791_p4 = pnand %p790_p6, %p784_p3 }
 0x185   : > { %794 = shalt.err (!%p791_p4)
}
 0x186   : > { %541 = dma.vmem_to_hbm [thread:$0]  (%p1352_p13), %s1225_s0, 64, %s1223_s29, %s356_s9  }
 0x187 PF: > { %p558_p10 = scmp.ge.s32.totalorder %s917_s25, 2  ;;  %s384_s20 = sand.u32 1, %s865_s12  }
 0x188   : > { %p1353_p12 = scmp.ne.s32.totalorder %s1338_s26, 0  ;;  %s385_s28 = scalar_lea.sflag [#allocation4], %s384_s20 }
 0x18a   : > { %p554_p7 = pnand %p558_p10, %p1353_p12 }
 0x18c   : > { %860 = dma.done.wait (!%p554_p7), %s385_s28, 64  }
 0x18d   : > { %862 = vsyncadd (!%p554_p7), %s385_s28, 4294967232  ;;  %s22_s25 = sadd.s32 1, %s917_s25   ;;  %s1355_s0 = sld [smem:[#allocation19_spill]] }
 0x18e   : > { %p1253_p9 = scmp.ge.s32.totalorder %s22_s25, 10   ;;  %s1356_s8 = sld [smem:[#allocation12_spill]] }
 0x18f   : > { %s1357_s20 = sld [smem:[#allocation20_spill]]  ;;  %s1358_s26 = sld [smem:[#allocation15_spill]] }
 0x190   : > { %s1359_s30 = sld [smem:[#allocation16_spill]]  ;;  %s1360_s24 = sld [smem:[#allocation17_spill]] }
 0x191   : > { %s1361_s12 = smov %s869_s13  ;;  %s1362_s13 = smov %s873_s14 }
 0x192   : > { %s1363_s14 = smov %s1131_s22  ;;  %s1364_s15 = smov %s881_s16 }
 0x193   : > { %s1365_s16 = smov %s885_s17  ;;  %s1366_s17 = smov %s1355_s0 }
 0x194   : > { %s1367_s18 = smov %s893_s19  ;;  %s1368_s19 = smov %s1356_s8 }
 0x195   : > { %s1369_s21 = smov %s909_s23  ;;  %s1370_s22 = smov %s1358_s26 }
 0x196   : > { %s1371_s23 = smov %s1359_s30  ;;  %21 = sbr.rel (!%p1253_p9) target bundleno = 16 (0x10), region = 101 }
 0x19d   :  { %390 = vsyncpa [#allocation3], 1 }
 0x19e   :  { %392 = vsyncpa [#allocation3 + $0x1], 1 }
 0x19f   :  { %393 = vsyncpa [#allocation6], 1 }
 0x1a0   :  { %395 = vsyncpa [#allocation6 + $0x1], 1 }
 0x1a1   :  { %396 = vsyncpa [#allocation4], 1 }
 0x1a2   :  { %398 = vsyncpa [#allocation4 + $0x1], 1 }

</bundles_post_ra>
